<compile_context>
chip_gen: v6e
topology: v6e:2x2x1
jax: 0.10.0
libtpu: 0.0.40
codegen_flags: <defaults>
</compile_context>

<pallas_src>
import jax
import jax.numpy as jnp
from jax.experimental import pallas as pl
from jax.experimental.pallas import tpu as pltpu


# -------------------- fused kernel --------------------

def _gcn_fused_kernel(x_ref, w_in_ref, b_in_ref, a_ref, w_out_ref, b_out_ref,
                      o_ref, acc_ref):
    # x_ref:     (N, Dp)       node states of this batch (f32, feature-padded)
    # w_in_ref:  (E, Dp, Dp)   all linear_in weight blocks (resident in VMEM)
    # b_in_ref:  (E, 1, Dp)    all linear_in bias blocks (resident in VMEM)
    # a_ref:     (TM, N)       adjacency slab tile for (batch, row tile, edge e)
    # w_out_ref: (Dp, Dop)     linear_out weight (transposed, padded)
    # b_out_ref: (1, Dop)      linear_out bias (padded)
    # o_ref:     (TM, Dop)     output tile
    # acc_ref:   (TM, Dp)      f32 accumulator; persists across the e axis
    e = pl.program_id(2)

    @pl.when(e == 0)
    def _():
        acc_ref[...] = jnp.zeros_like(acc_ref)

    # 0/1 mask arrives packed (int8 by default); the upcast is a cheap VPU convert.
    a = a_ref[...].astype(jnp.float32)

    # Exact refactoring:  A'_e @ (x W_e + 1 b_e) == (A'_e @ x) W_e + rowsum(A'_e) b_e.
    # Same total MXU work as the original formulation, no H_e recompute, no
    # (N, D) scratch, and e can stay the innermost reduction axis.
    p = jnp.dot(a, x_ref[...], preferred_element_type=jnp.float32)       # (TM, Dp)
    deg = jnp.sum(a, axis=1, keepdims=True)                              # (TM, 1) XLU
    acc_ref[...] += (jnp.dot(p, w_in_ref[e], preferred_element_type=jnp.float32)
                     + deg * b_in_ref[e])

    # Finalize this row tile: linear_out, lane-dense (padded) store.
    @pl.when(e == pl.num_programs(2) - 1)
    def _():
        o_ref[...] = (jnp.dot(acc_ref[...], w_out_ref[...],
                              preferred_element_type=jnp.float32)
                      + b_out_ref[...]).astype(o_ref.dtype)


# -------------------- sizing helpers --------------------

def _round_up(x, m):
    return ((x + m - 1) // m) * m


def _pick_vmem_limit():
    """~96 MiB budget on 128-MiB-VMEM chips (v5e/v6e); 32 MiB on 64-MiB v7x."""
    cap = None
    try:
        cap = getattr(pltpu.get_tpu_info(), "vmem_capacity_bytes", None)
    except Exception:
        cap = None
    if cap is None or cap <= 64 * 1024 * 1024:
        return 32 * 1024 * 1024
    return 96 * 1024 * 1024


def _vmem_bytes(tm, n, dp, dop, e, adj_itemsize):
    """Rough double-buffered VMEM footprint of one grid step."""
    return (2 * n * dp * 4                 # x (resident per batch; 2 buffers)
            + 2 * e * dp * dp * 4          # linear_in weights (resident)
            + 2 * e * 8 * dp * 4           # linear_in biases (sublane-padded)
            + 2 * tm * n * adj_itemsize    # adjacency tiles
            + 2 * dp * dop * 4             # linear_out weight
            + 2 * 8 * dop * 4              # linear_out bias
            + 2 * tm * dop * 4             # output tiles
            + tm * dp * 4)                 # accumulator scratch


def _pick_row_tile(n, dp, dop, e, adj_itemsize, budget):
    # Largest tile that divides N and fits the VMEM budget; multiples of 32
    # keep int8 sublane packing clean.
    for cand in (1024, 512, 256, 128, 64, 32, 16, 8):
        if n % cand == 0 and _vmem_bytes(cand, n, dp, dop, e, adj_itemsize) <= budget:
            return cand
    # TODO(synk): oddly-sized N falls back to a single (possibly large) tile.
    return n


# -------------------- wrapper --------------------

def graph_conv_layer(in_state, adj_matrix, w_in, b_in, w_out, b_out,
                     *, adj_dtype=jnp.int8, pad_features=True):
    """
    in_state:   [B, N, D]      float32
    adj_matrix: [B, N, N, E]   dense 0/1 mask (any numeric dtype)
    w_in:       [D*E, D]       nn.Linear weight layout (out, in)
    b_in:       [D*E]
    w_out:      [D_out, D]
    b_out:      [D_out]
    adj_dtype:  dtype the adjacency is streamed in.  int8 is exact for 0/1
                masks; pass None to stream the input dtype unchanged (required
                if the adjacency carries non-{0,1} edge weights).  In a
                multi-step GNN, cast the adjacency once upstream so the
                wrapper's cast becomes a no-op across propagation steps.
    returns:    [B, N, D_out]
    """
    B, N, D = in_state.shape
    E = adj_matrix.shape[-1]
    D_out = w_out.shape[0]
    assert w_in.shape == (D * E, D) and b_in.shape == (D * E,)
    assert w_out.shape == (D_out, D) and b_out.shape == (D_out,)

    Dp = _round_up(D, 128) if pad_features else D
    Dop = _round_up(D_out, 128) if pad_features else D_out

    # ---- weight/bias preprocessing (tiny, one-off) -------------------------
    # linear_in output feature f = d*E + e (PyTorch .view(-1, N, D, E)); regroup
    # into per-edge-type (D, D) blocks so x @ w_in_eff[e] is the e-th slice of
    # the gcn_state_reshape output.
    w_in_eff = jnp.transpose(w_in.reshape(D, E, D), (1, 2, 0))            # (E, D, D)
    b_in_eff = jnp.transpose(b_in.reshape(D, E), (1, 0))[:, None, :]      # (E, 1, D)
    w_out_eff = jnp.transpose(w_out)                                      # (D, D_out)
    b_out_eff = b_out.reshape(1, D_out)
    if Dp != D or Dop != D_out:
        w_in_eff = jnp.pad(w_in_eff, ((0, 0), (0, Dp - D), (0, Dp - D)))
        b_in_eff = jnp.pad(b_in_eff, ((0, 0), (0, 0), (0, Dp - D)))
        w_out_eff = jnp.pad(w_out_eff, ((0, Dp - D), (0, Dop - D_out)))
        b_out_eff = jnp.pad(b_out_eff, ((0, 0), (0, Dop - D_out)))
    x = in_state if Dp == D else jnp.pad(in_state, ((0, 0), (0, 0), (0, Dp - D)))

    # ---- adjacency: optional one-off compaction cast, NO transpose ---------
    # NOTE: the 0/1 assumption makes the int8 cast exact; weighted adjacencies
    #       must pass adj_dtype=None.
    if adj_dtype is not None and adj_matrix.dtype != adj_dtype:
        adj_matrix = adj_matrix.astype(adj_dtype)   # hoist upstream in multi-step GNNs
    adj_itemsize = jnp.dtype(adj_matrix.dtype).itemsize

    vmem_limit = _pick_vmem_limit()
    tm = _pick_row_tile(N, Dp, Dop, E, adj_itemsize, budget=int(vmem_limit * 0.8))

    if E == 1 or N % 128 == 0:
        # Fast path: a free reshape exposes every per-edge-type slab A'_e as a
        # contiguous length-N block of the flat (n2, e) column axis.
        a = adj_matrix.reshape(B, N, N * E)
        a_spec = pl.BlockSpec((None, tm, N), lambda b, mi, e: (b, mi, e))
    else:
        # TODO(synk): lane-alignment fallback does a real HBM transpose; pad N
        #             to a multiple of 128 upstream to stay on the fast path.
        a = jnp.transpose(adj_matrix.reshape(B, N, E, N), (0, 2, 1, 3))    # (B, E, N, N)
        a_spec = pl.BlockSpec((None, None, tm, N), lambda b, mi, e: (b, e, mi, 0))

    out_padded = pl.pallas_call(
        _gcn_fused_kernel,
        out_shape=jax.ShapeDtypeStruct((B, N, Dop), in_state.dtype),
        grid=(B, N // tm, E),
        in_specs=[
            # x: resident per batch.  On v7x, pipeline_mode=pl.Buffered(1) here
            # would halve its VMEM footprint (block index only changes with b).
            pl.BlockSpec((None, N, Dp), lambda b, mi, e: (b, 0, 0)),
            pl.BlockSpec((E, Dp, Dp), lambda b, mi, e: (0, 0, 0)),   # all W_e, resident
            pl.BlockSpec((E, 1, Dp), lambda b, mi, e: (0, 0, 0)),    # all b_e, resident
            a_spec,                                                  # A'_e row tile
            pl.BlockSpec((Dp, Dop), lambda b, mi, e: (0, 0)),        # W_out^T
            pl.BlockSpec((1, Dop), lambda b, mi, e: (0, 0)),         # b_out
        ],
        out_specs=pl.BlockSpec((None, tm, Dop), lambda b, mi, e: (b, mi, 0)),
        scratch_shapes=[pltpu.VMEM((tm, Dp), jnp.float32)],
        compiler_params=pltpu.CompilerParams(
            dimension_semantics=("parallel", "parallel", "arbitrary"),
            vmem_limit_bytes=vmem_limit,
        ),
    )(x, w_in_eff, b_in_eff, a, w_out_eff, b_out_eff)

    return out_padded if Dop == D_out else out_padded[:, :, :D_out]


# -------------------- reference (plain JAX, literal PyTorch semantics) --------------------

def graph_conv_layer_ref(in_state, adj_matrix, w_in, b_in, w_out, b_out):
    B, N, D = in_state.shape
    E = adj_matrix.shape[-1]
    hp = jax.lax.Precision.HIGHEST
    h = jnp.einsum("bnd,od->bno", in_state, w_in, precision=hp) + b_in
    s = h.reshape(B, N, D, E).transpose(0, 3, 1, 2).reshape(B, N * E, D)
    a = adj_matrix.reshape(B, N, N * E)
    t = jnp.einsum("bnk,bkd->bnd", a, s, precision=hp)
    return jnp.einsum("bnd,od->bno", t, w_out, precision=hp) + b_out


# -------------------- main --------------------

if __name__ == "__main__":
    def _run_case(key, B, N, D_in, E, D_out):
        k1, k2, k3, k4, k5, k6 = jax.random.split(key, 6)
        in_state = jax.random.normal(k1, (B, N, D_in), dtype=jnp.float32)
        # TODO(synk): `to_dense` is undefined in the original snippet; the
        #             [B, N, N, E] adjacency is assumed already dense here.
        adj_matrix = (jax.random.uniform(k2, (B, N, N, E)) > 0.7).astype(jnp.float32)
        scale = 1.0 / jnp.sqrt(jnp.float32(D_in))
        w_in = jax.random.uniform(k3, (D_in * E, D_in), dtype=jnp.float32,
                                  minval=-scale, maxval=scale)
        b_in = jax.random.uniform(k4, (D_in * E,), dtype=jnp.float32,
                                  minval=-scale, maxval=scale)
        w_out = jax.random.uniform(k5, (D_out, D_in), dtype=jnp.float32,
                                   minval=-scale, maxval=scale)
        b_out = jax.random.uniform(k6, (D_out,), dtype=jnp.float32,
                                   minval=-scale, maxval=scale)

        out = graph_conv_layer(in_state, adj_matrix, w_in, b_in, w_out, b_out)
        out = jax.block_until_ready(out)
        ref = graph_conv_layer_ref(in_state, adj_matrix, w_in, b_in, w_out, b_out)
        assert out.shape == (B, N, D_out), (out.shape, (B, N, D_out))
        err = float(jnp.max(jnp.abs(out - ref)))
        assert jnp.allclose(out, ref, atol=1e-3, rtol=1e-3), f"max abs err {err}"

    key = jax.random.PRNGKey(0)
    k_fast, k_small = jax.random.split(key)
    # Fast path: N a multiple of 128 -> no adjacency transpose, int8 streaming.
    _run_case(k_fast, B=2, N=128, D_in=16, E=4, D_out=24)
    # Tiny-N lane-alignment fallback path (transposed adjacency layout).
    _run_case(k_small, B=2, N=8, D_in=8, E=4, D_out=16)

    print("KERNEL_OK")
</pallas_src>

<mosaic_0001>
module attributes {stable_mosaic.version = 11 : i64} {
  func.func @_gcn_fused_kernel(%arg0: i32, %arg1: i32, %arg2: i32, %arg3: memref<1x128x128xf32, #tpu.memory_space<vmem>>, %arg4: memref<4x128x128xf32, #tpu.memory_space<vmem>>, %arg5: memref<4x1x128xf32, #tpu.memory_space<vmem>>, %arg6: memref<1x128x128xi8, #tpu.memory_space<vmem>>, %arg7: memref<128x128xf32, #tpu.memory_space<vmem>>, %arg8: memref<1x128xf32, #tpu.memory_space<vmem>>, %arg9: memref<1x128x128xf32, #tpu.memory_space<vmem>>, %arg10: memref<128x128xf32, #tpu.memory_space<vmem>>) attributes {dimension_semantics = [#tpu.dimension_semantics<parallel>, #tpu.dimension_semantics<parallel>, #tpu.dimension_semantics<arbitrary>], iteration_bounds = array<i64: 2, 1, 4>, scalar_prefetch = 0 : i64, scratch_operands = 1 : i64, tpu.core_type = #tpu.core_type<tc>, window_params = [{transform_indices = @transform_0, window_bounds = array<i64: 1, 128, 128>}, {pipeline_mode = #tpu.pipeline_mode<synchronous>, transform_indices = @transform_1, window_bounds = array<i64: 4, 128, 128>}, {pipeline_mode = #tpu.pipeline_mode<synchronous>, transform_indices = @transform_2, window_bounds = array<i64: 4, 1, 128>}, {transform_indices = @transform_3, window_bounds = array<i64: 1, 128, 128>}, {pipeline_mode = #tpu.pipeline_mode<synchronous>, transform_indices = @transform_4, window_bounds = array<i64: 128, 128>}, {pipeline_mode = #tpu.pipeline_mode<synchronous>, transform_indices = @transform_5, window_bounds = array<i64: 1, 128>}, {transform_indices = @transform_6, window_bounds = array<i64: 1, 128, 128>}]} {
    %c0_i32 = arith.constant 0 : i32
    %0 = arith.cmpi eq, %arg2, %c0_i32 : i32
    %1 = arith.extui %0 : i1 to i32
    %c0_i32_0 = arith.constant 0 : i32
    %2 = arith.cmpi ne, %1, %c0_i32_0 : i32
    scf.if %2 {
      %cst_17 = arith.constant 0.000000e+00 : f32
      %28 = vector.broadcast %cst_17 : f32 to vector<128x128xf32>
      %c0_18 = arith.constant 0 : index
      %c0_19 = arith.constant 0 : index
      %29 = vector.load %arg10[%c0_18, %c0_19] : memref<128x128xf32, #tpu.memory_space<vmem>>, vector<128x128xf32>
      tpu.vector_store %arg10[%c0_18, %c0_19], %28 {strides = array<i32>} : memref<128x128xf32, #tpu.memory_space<vmem>>, vector<128x128xf32>,
    } else {
    }
    %c0 = arith.constant 0 : index
    %c0_1 = arith.constant 0 : index
    %c0_2 = arith.constant 0 : index
    %3 = vector.load %arg6[%c0, %c0_1, %c0_2] : memref<1x128x128xi8, #tpu.memory_space<vmem>>, vector<1x128x128xi8>
    %4 = vector.shape_cast %3 : vector<1x128x128xi8> to vector<128x128xi8>
    %5 = arith.sitofp %4 : vector<128x128xi8> to vector<128x128xf32>
    %c0_3 = arith.constant 0 : index
    %c0_4 = arith.constant 0 : index
    %c0_5 = arith.constant 0 : index
    %6 = vector.load %arg3[%c0_3, %c0_4, %c0_5] : memref<1x128x128xf32, #tpu.memory_space<vmem>>, vector<1x128x128xf32>
    %7 = vector.shape_cast %6 : vector<1x128x128xf32> to vector<128x128xf32>
    %cst = arith.constant dense<0.000000e+00> : vector<128x128xf32>
    %8 = tpu.matmul %5, %7, %cst {dimension_numbers = #tpu.dot_dimension_numbers<[1], [0], [0], [1], [0, 0, 1, 1], [], []>} : vector<128x128xf32>, vector<128x128xf32>, vector<128x128xf32> -> vector<128x128xf32>
    %cst_6 = arith.constant dense<0.000000e+00> : vector<128xf32>
    %9 = vector.multi_reduction <add>, %5, %cst_6 [1] : vector<128x128xf32> to vector<128xf32>
    %10 = vector.shape_cast %9 : vector<128xf32> to vector<128x1xf32>
    %c0_7 = arith.constant 0 : index
    %c0_8 = arith.constant 0 : index
    %11 = vector.load %arg10[%c0_7, %c0_8] : memref<128x128xf32, #tpu.memory_space<vmem>>, vector<128x128xf32>
    %12 = arith.index_cast %arg2 : i32 to index
    %c0_9 = arith.constant 0 : index
    %c0_10 = arith.constant 0 : index
    %13 = vector.load %arg4[%12, %c0_9, %c0_10] : memref<4x128x128xf32, #tpu.memory_space<vmem>>, vector<1x128x128xf32>
    %14 = vector.shape_cast %13 : vector<1x128x128xf32> to vector<128x128xf32>
    %cst_11 = arith.constant dense<0.000000e+00> : vector<128x128xf32>
    %15 = tpu.matmul %8, %14, %cst_11 {dimension_numbers = #tpu.dot_dimension_numbers<[1], [0], [0], [1], [0, 0, 1, 1], [], []>} : vector<128x128xf32>, vector<128x128xf32>, vector<128x128xf32> -> vector<128x128xf32>
    %16 = arith.index_cast %arg2 : i32 to index
    %c0_12 = arith.constant 0 : index
    %c0_13 = arith.constant 0 : index
    %17 = vector.load %arg5[%16, %c0_12, %c0_13] : memref<4x1x128xf32, #tpu.memory_space<vmem>>, vector<1x1x128xf32>
    %18 = vector.shape_cast %17 : vector<1x1x128xf32> to vector<1x128xf32>
    %19 = vector.broadcast %10 : vector<128x1xf32> to vector<128x128xf32>
    %20 = vector.broadcast %18 : vector<1x128xf32> to vector<128x128xf32>
    %21 = arith.mulf %19, %20 : vector<128x128xf32>
    %22 = arith.addf %15, %21 : vector<128x128xf32>
    %23 = arith.addf %11, %22 : vector<128x128xf32>
    %c0_14 = arith.constant 0 : index
    %c0_15 = arith.constant 0 : index
    %24 = vector.load %arg10[%c0_14, %c0_15] : memref<128x128xf32, #tpu.memory_space<vmem>>, vector<128x128xf32>
    tpu.vector_store %arg10[%c0_14, %c0_15], %23 {strides = array<i32>} : memref<128x128xf32, #tpu.memory_space<vmem>>, vector<128x128xf32>,
    %c3_i32 = arith.constant 3 : i32
    %25 = arith.cmpi eq, %arg2, %c3_i32 : i32
    %26 = arith.extui %25 : i1 to i32
    %c0_i32_16 = arith.constant 0 : i32
    %27 = arith.cmpi ne, %26, %c0_i32_16 : i32
    scf.if %27 {
      %c0_17 = arith.constant 0 : index
      %c0_18 = arith.constant 0 : index
      %28 = vector.load %arg10[%c0_17, %c0_18] : memref<128x128xf32, #tpu.memory_space<vmem>>, vector<128x128xf32>
      %c0_19 = arith.constant 0 : index
      %c0_20 = arith.constant 0 : index
      %29 = vector.load %arg7[%c0_19, %c0_20] : memref<128x128xf32, #tpu.memory_space<vmem>>, vector<128x128xf32>
      %cst_21 = arith.constant dense<0.000000e+00> : vector<128x128xf32>
      %30 = tpu.matmul %28, %29, %cst_21 {dimension_numbers = #tpu.dot_dimension_numbers<[1], [0], [0], [1], [0, 0, 1, 1], [], []>} : vector<128x128xf32>, vector<128x128xf32>, vector<128x128xf32> -> vector<128x128xf32>
      %c0_22 = arith.constant 0 : index
      %c0_23 = arith.constant 0 : index
      %31 = vector.load %arg8[%c0_22, %c0_23] : memref<1x128xf32, #tpu.memory_space<vmem>>, vector<1x128xf32>
      %32 = vector.broadcast %31 : vector<1x128xf32> to vector<128x128xf32>
      %33 = arith.addf %30, %32 : vector<128x128xf32>
      %c0_24 = arith.constant 0 : index
      %c0_25 = arith.constant 0 : index
      %c0_26 = arith.constant 0 : index
      %34 = vector.load %arg9[%c0_24, %c0_25, %c0_26] : memref<1x128x128xf32, #tpu.memory_space<vmem>>, vector<1x128x128xf32>
      %35 = vector.shape_cast %34 : vector<1x128x128xf32> to vector<128x128xf32>
      %36 = vector.shape_cast %33 : vector<128x128xf32> to vector<1x128x128xf32>
      tpu.vector_store %arg9[%c0_24, %c0_25, %c0_26], %36 {strides = array<i32>} : memref<1x128x128xf32, #tpu.memory_space<vmem>>, vector<1x128x128xf32>,
    } else {
    }
    return
  }
  func.func @transform_0(%arg0: i32, %arg1: i32, %arg2: i32) -> (i32, i32, i32) {
    %c0_i32 = arith.constant 0 : i32
    %c0_i32_0 = arith.constant 0 : i32
    %c0_i32_1 = arith.constant 0 : i32
    return %arg0, %c0_i32, %c0_i32_0 : i32, i32, i32
  }
  func.func @transform_1(%arg0: i32, %arg1: i32, %arg2: i32) -> (i32, i32, i32) {
    %c0_i32 = arith.constant 0 : i32
    %c0_i32_0 = arith.constant 0 : i32
    %c0_i32_1 = arith.constant 0 : i32
    %c0_i32_2 = arith.constant 0 : i32
    return %c0_i32, %c0_i32_0, %c0_i32_1 : i32, i32, i32
  }
  func.func @transform_2(%arg0: i32, %arg1: i32, %arg2: i32) -> (i32, i32, i32) {
    %c0_i32 = arith.constant 0 : i32
    %c0_i32_0 = arith.constant 0 : i32
    %c0_i32_1 = arith.constant 0 : i32
    %c0_i32_2 = arith.constant 0 : i32
    return %c0_i32, %c0_i32_0, %c0_i32_1 : i32, i32, i32
  }
  func.func @transform_3(%arg0: i32, %arg1: i32, %arg2: i32) -> (i32, i32, i32) {
    %c0_i32 = arith.constant 0 : i32
    return %arg0, %arg1, %arg2 : i32, i32, i32
  }
  func.func @transform_4(%arg0: i32, %arg1: i32, %arg2: i32) -> (i32, i32) {
    %c0_i32 = arith.constant 0 : i32
    %c0_i32_0 = arith.constant 0 : i32
    %c0_i32_1 = arith.constant 0 : i32
    return %c0_i32, %c0_i32_0 : i32, i32
  }
  func.func @transform_5(%arg0: i32, %arg1: i32, %arg2: i32) -> (i32, i32) {
    %c0_i32 = arith.constant 0 : i32
    %c0_i32_0 = arith.constant 0 : i32
    %c0_i32_1 = arith.constant 0 : i32
    return %c0_i32, %c0_i32_0 : i32, i32
  }
  func.func @transform_6(%arg0: i32, %arg1: i32, %arg2: i32) -> (i32, i32, i32) {
    %c0_i32 = arith.constant 0 : i32
    %c0_i32_0 = arith.constant 0 : i32
    return %arg0, %arg1, %c0_i32 : i32, i32, i32
  }
}

</mosaic_0001>

<bundles_post_ra>
// kernel: tpu_custom_call.1
= control target key start
LH: loop header
LB: loop body
LE: loop exit
PB: predicated region body
PF: predicated region fallthrough
CT: control target
= control target key end

     0   :  { %s2425_s0 = inlined_call_operand.hbm [shape: f32[2,128,128], index: 0, kind: input, shape index: {}]   ;;  %s2426_s1 = inlined_call_operand.hbm [shape: f32[4,128,128], index: 1, kind: input, shape index: {}]   ;;  %s2427_s2 = inlined_call_operand.hbm [shape: f32[4,1,128], index: 2, kind: input, shape index: {}]   ;;  %s2428_s3 = inlined_call_operand.hbm [shape: s8[2,128,512], index: 3, kind: input, shape index: {}]   ;;  %s2429_s4 = inlined_call_operand.hbm [shape: f32[128,128], index: 4, kind: input, shape index: {}]   ;;  %s2430_s5 = inlined_call_operand.vmem [shape: f32[1,128], index: 5, kind: input, shape index: {}]   ;;  %s2431_s6 = inlined_call_operand.hbm [shape: f32[2,128,128], index: 6, kind: output, shape index: {}]  }
   0x1   :  { %2448 = sst [smem:[#allocation27_spill]] %s2425_s0 }
   0x2   :  { %2449 = sst [smem:[#allocation28_spill]] %s2426_s1 }
   0x3   :  { %2450 = sst [smem:[#allocation29_spill]] %s2427_s2 }
   0x4   :  { %2451 = sst [smem:[#allocation30_spill]] %s2429_s4 }
   0x5   :  { %2452 = sst [smem:[#allocation31_spill]] %s2430_s5 }
   0x6   :  { %2453 = sst [smem:[#allocation32_spill]] %s2431_s6 }
   0x7   :  { %11 = vsyncpa [#allocation4], 0 }
   0x8   :  { %13 = vsyncpa [#allocation4 + $0x1], 0 }
   0x9   :  { %14 = vsyncpa [#allocation7], 0 }
   0xa   :  { %15 = vsyncpa [#allocation10], 0 }
   0xb   :  { %17 = vsyncpa [#allocation10 + $0x1], 0 }
   0xc   :  { %18 = vsyncpa [#allocation5], 0 }
   0xd   :  { %20 = vsyncpa [#allocation5 + $0x1], 0  ;;  %s2027_s21 = smov 0   ;;  %s2029_s22 = smov 0  }
   0xe   :  { %s2031_s23 = smov 0   ;;  %s2033_s24 = smov 0  }
   0xf   :  { %s2035_s25 = smov 0   ;;  %s2037_s26 = smov 0  }
  0x10   :  { %s2039_s27 = smov 0   ;;  %s2041_s28 = smov 0  }
  0x11   :  { %s2043_s29 = smov 0   ;;  %s2045_s30 = smov 0  }
  0x12   :  { %s2047_s7 = smov 0  }
  0x13 LB: > { %2454 = sst [smem:[#allocation18_spill]] %s1948_s24  ;;  %s2081_s8 = sadd.s32 4294967295, %s1976_s7   ;;  %s1976_s7 = sphi %s2047_s7, %s26_s7   ;;  %s1972_s30 = sphi %s2045_s30, %s2509_s30   ;;  %s1968_s29 = sphi %s2043_s29, %s2508_s29   ;;  %s1964_s28 = sphi %s2041_s28, %s2507_s28   ;;  %s1960_s27 = sphi %s2039_s27, %s2506_s27   ;;  %s1956_s26 = sphi %s2037_s26, %s2498_s26   ;;  %s1952_s25 = sphi %s2035_s25, %s2505_s25   ;;  %s1948_s24 = sphi %s2033_s24, %s2504_s24   ;;  %s1944_s23 = sphi %s2031_s23, %s2503_s23   ;;  %s1940_s22 = sphi %s2029_s22, %s2502_s22   ;;  %s1936_s21 = sphi %s2027_s21, %s2501_s21  }
  0x14   : > { %2455 = sst [smem:[#allocation19_spill]] %s1956_s26  ;;  %s1237_s9 = sadd.s32 4294967294, %s1976_s7  }
  0x15   : > { %2456 = sst [smem:[#allocation20_spill]] %s1960_s27  ;;  %p65_p0 = scmp.ne.s32.totalorder %s1952_s25, %s1948_s24 }
  0x16   : > { %2457 = sst [smem:[#allocation21_spill]] %s1964_s28  ;;  %p2432_p1 = scmp.eq.s32.totalorder %s2081_s8, 0 }
  0x17   : > { %p137_p4 = scmp.ne.s32.totalorder %s1940_s22, %s1936_s21  ;;  %p211_p6 = scmp.eq.s32.totalorder %s1237_s9, 7 }
  0x18   : > { %p2092_p3 = por %p2432_p1, %p65_p0  ;;  %p1238_p8 = scmp.ge.s32.totalorder %s1976_s7, 1 }
  0x19   : > { %p2100_p7 = por %p137_p4, %p2432_p1  ;;  %p2105_p9 = por %p211_p6, %p65_p0 }
  0x1a   : > { %p218_p10 = scmp.lt.s32.totalorder %s1976_s7, 9  ;;  %s1978_s15 = smov [#allocation6]  }
  0x1b   : > { %s2459_s12 = scalar_select %p2100_p7, 1, 0 }
  0x1c   : > { %s2460_s13 = scalar_select %p2105_p9, 1, 0 }
  0x1d   : > { %p2110_p11 = pnand %p1238_p8, %p218_p10  ;;  %s230_s16 = sshll.u32 %s1978_s15, 4  ;;  %s231_s16 = int_to_ptr.vmem [resolvable:$true] %s230_s16 }
  0x1e   : > { %2461 = sst [smem:[#allocation22_spill]] %s2460_s13  ;;  %s1979_s18 = smov [#allocation11]  }
  0x1f   : > { %p1582_p12 = pneg %p2110_p11  ;;  %s256_s19 = sshll.u32 %s1979_s18, 4  ;;  %s257_s19 = int_to_ptr.vmem [resolvable:$true] %s256_s19 }
  0x20   : > { %s1980_s20 = smov [#allocation8]   ;;  %s1721_s9 = scalar_lea.vmem %s231_s16, 8192 }
  0x21   : > { %p2118_p13 = pnand %p1582_p12, %p2432_p1  ;;  %s243_s21 = sshll.u32 %s1980_s20, 4  ;;  %s244_s21 = int_to_ptr.vmem [resolvable:$true] %s243_s21 }
  0x22   : > { %p1722_p4 = scmp.ne.s32.totalorder %s231_s16, %s1721_s9  ;;  %p1729_p10 = scmp.lt.s32.totalorder %s231_s16, %s231_s16 }
  0x23   : > { %p1712_p0 = pneg %p2118_p13  ;;  %p1730_p12 = scmp.lt.s32.totalorder %s1721_s9, %s1721_s9 }
  0x25   : > { %p1724_p6 = pnand %p1722_p4, %p1712_p0  ;;  %p1731_p1 = por %p1730_p12, %p1729_p10 }
  0x27   : > { %p1725_p8 = pneg %p1724_p6 }
  0x29   : > { %p1732_p2 = pnand %p1731_p1, %p1725_p8 }
  0x2b   : > { %1735 = shalt.err (!%p1732_p2)
}
  0x2c   : > { %s2435_s15 = smov 128   ;;  %s2437_s18 = smov 8  }
  0x2d   : > { %s2464_s1 = sld [smem:[#allocation28_spill]]  ;;  %s1747_s13 = scalar_lea.vmem %s257_s19, 2048 }
  0x2e   : > { %p1748_p4 = scmp.ne.s32.totalorder %s257_s19, %s1747_s13  ;;  %p1755_p1 = scmp.lt.s32.totalorder %s257_s19, %s257_s19 }
  0x2f   : > { %p1756_p2 = scmp.lt.s32.totalorder %s1747_s13, %s1747_s13 }
  0x30   : > { %p1750_p6 = pnand %p1748_p4, %p1712_p0 }
  0x31   : > { %p1757_p8 = por %p1756_p2, %p1755_p1 }
  0x32   : > { %p1751_p10 = pneg %p1750_p6 }
  0x33   : > { %1585 = dma.hbm_to_vmem [thread:$0]  (!%p2118_p13), %s2464_s1, 8192, %s231_s16, [#allocation7], %s2435_s15, %s2435_s15, %s2437_s18  }
  0x34   : > { %p1758_p12 = pnand %p1757_p8, %p1751_p10 }
  0x36   : > { %1761 = shalt.err (!%p1758_p12)
}
  0x37   : > { %s2465_s4 = sld [smem:[#allocation30_spill]]  ;;  %s1773_s10 = scalar_lea.vmem %s244_s21, 64 }
  0x38   : > { %p1774_p5 = scmp.ne.s32.totalorder %s244_s21, %s1773_s10  ;;  %p1781_p1 = scmp.lt.s32.totalorder %s244_s21, %s244_s21 }
  0x39   : > { %p1782_p10 = scmp.lt.s32.totalorder %s1773_s10, %s1773_s10 }
  0x3a   : > { %p1776_p4 = pnand %p1774_p5, %p1712_p0 }
  0x3b   : > { %p1783_p2 = por %p1782_p10, %p1781_p1 }
  0x3c   : > { %p1777_p6 = pneg %p1776_p4 }
  0x3d   : > { %1591 = dma.hbm_to_vmem [thread:$0]  (!%p2118_p13), %s2465_s4, 2048, %s257_s19, [#allocation10], %s2435_s15, %s2435_s15, %s2437_s18  }
  0x3e   : > { %p1784_p8 = pnand %p1783_p2, %p1777_p6 }
  0x40   : > { %1787 = shalt.err (!%p1784_p8)
}
  0x41   : > { %s1983_s13 = smov 16   ;;  %s1984_s24 = smov 1  }
  0x42   : > { %s2466_s2 = sld [smem:[#allocation29_spill]]  ;;  %s38_s20 = sadd.s32 1, %s1968_s29 }
  0x43   : > { %p39_p5 = scmp.ge.s32.totalorder %s38_s20, 4  ;;  %s45_s9 = sadd.s32 1, %s1972_s30 }
  0x44   : > { %s52_s10 = sadd.s32 1, %s1956_s26  ;;  %p59_p0 = scmp.ne.s32.totalorder %s1956_s26, %s1952_s25 }
  0x45   : > { %s2511_s20 = smov (%p39_p5, %s38_s20), 0  ;;  %s2513_s9 = smov (!%p39_p5, %s45_s9), %s1972_s30 }
  0x46   : > { %2467 = sst [smem:[#allocation23_spill]] %s2511_s20  ;;  %p60_p12 = scmp.eq.s32.totalorder %s1976_s7, 0 }
  0x47   : > { %s120_s17 = ssub.s32 %s1968_s29, %s2511_s20  ;;  %p47_p4 = scmp.ge.s32.totalorder %s2513_s9, 2 }
  0x48   : > { %1588 = dma.hbm_to_vmem [thread:$0]  (!%p2118_p13), %s2466_s2, 64, %s244_s21, [#allocation7], %s1983_s13, %s1983_s13, %s1984_s24  }
  0x49   : > { %p2468_p6 = scmp.eq.s32.totalorder %s2081_s8, 7  ;;  %p2171_p1 = por %p60_p12, %p59_p0 }
  0x4a   : > { %p2472_p10 = scmp.ne.s32.totalorder %s1944_s23, %s1940_s22  ;;  %s2515_s9 = smov (%p47_p4, %s2513_s9), 0 }
  0x4b   : > { %p2167_p13 = por %p2468_p6, %p59_p0  ;;  %2474 = sst [smem:[#allocation25_spill]] %s2515_s9 }
  0x4c   : > { %p2178_p2 = por %p2472_p10, %p60_p12  ;;  %p1606_p8 = scmp.lt.s32.totalorder %s1976_s7, 8 }
  0x4d   : > { %s2469_s21 = scalar_select %p2167_p13, 1, 0 }
  0x4e   : > { %s273_s16 = sand.u32 1, %s1956_s26   ;;  %s49_s19 = ssub.s32 %s1972_s30, %s2515_s9 }
  0x4f   : > { %2470 = sst [smem:[#allocation24_spill]] %s2469_s21  ;;  %p50_p5 = scmp.eq.s32.totalorder %s49_s19, 0 }
  0x50   : > { %s121_s15 = sor.u32 %s120_s17, %s49_s19  ;;  %s1243_s18 = sshll.u32 %s273_s16, 7 }
  0x51   : > { %p122_p0 = scmp.eq.s32.totalorder %s121_s15, 0  ;;  %s2476_s2 = sadd.s32 1, %s1944_s23 }
  0x52   : > { %s2189_s1 = scalar_select %p50_p5, %s1956_s26, %s52_s10  }
  0x53   : > { %s2194_s4 = scalar_select %p122_p0, %s1944_s23, %s2476_s2  }
  0x54   : > { %2475 = sst [smem:[#allocation26_spill]] %s2189_s1  ;;  %s1266_s20 = sshll.u32 %s1972_s30, 11 }
  0x55   : > { %s2477_s0 = sld [smem:[#allocation27_spill]]  ;;  %s277_s5 = scalar_lea.vmem [#allocation3], %s1243_s18 }
  0x56   : > { %s284_s27 = sshll.u32 %s277_s5, 4  ;;  %p2204_p12 = pnand %p1606_p8, %p2171_p1  ;;  %s285_s27 = int_to_ptr.vmem [resolvable:$true] %s284_s27 }
  0x57   : > { %p2212_p4 = pnand %p1606_p8, %p2178_p2  ;;  %s294_s15 = sand.u32 1, %s1976_s7  }
  0x58   : > { %s274_s10 = scalar_lea.sflag [#allocation4], %s273_s16  ;;  %p1790_p6 = pneg %p2204_p12 }
  0x59   : > { %s1801_s6 = scalar_lea.vmem %s285_s27, 2048  ;;  %s1985_s5 = smov [#allocation3]  }
  0x5a   : > { %p1802_p10 = scmp.ne.s32.totalorder %s285_s27, %s1801_s6  ;;  %s1806_s18 = sshll.u32 %s1985_s5, 4  ;;  %s1807_s18 = int_to_ptr.vmem [resolvable:$false] %s1806_s18 }
  0x5b   : > { %s283_s28 = scalar_lea.hbm %s2477_s0, %s1266_s20  ;;  %s1808_s20 = scalar_lea.vmem %s1807_s18, 4096 }
  0x5c   : > { %p1804_p5 = pnand %p1802_p10, %p1790_p6  ;;  %p1809_p1 = scmp.lt.s32.totalorder %s285_s27, %s1807_s18 }
  0x5d   : > { %p1810_p9 = scmp.lt.s32.totalorder %s1808_s20, %s1801_s6 }
  0x5e   : > { %p1805_p0 = pneg %p1804_p5 }
  0x5f   : > { %p1811_p13 = por %p1810_p9, %p1809_p1 }
  0x61   : > { %p1812_p7 = pnand %p1811_p13, %p1805_p0 }
  0x63   : > { %1815 = shalt.err (!%p1812_p7)
}
  0x64   : > { %s2480_s17 = smov 8   ;;  %s2481_s21 = smov 128  }
  0x65   : > { %1595 = dma.hbm_to_vmem [thread:$0]  (!%p2204_p12), %s283_s28, 2048, %s285_s27, %s274_s10, %s2481_s21, %s2481_s21, %s2480_s17  }
  0x66   : > { %s296_s13 = sand.u32 1, %s1944_s23   ;;  %s1247_s16 = sshll.u32 %s1972_s30, 4 }
  0x67   : > { %s1246_s24 = sshll.u32 %s296_s13, 5  ;;  %s306_s19 = sadd.s32 %s1968_s29, %s1247_s16 }
  0x68   : > { %s1248_s5 = sshll.u32 %s306_s19, 7  ;;  %s298_s18 = scalar_lea.vmem [#allocation9], %s1246_s24 }
  0x69   : > { %s309_s6 = sshll.u32 %s298_s18, 4  ;;  %s308_s1 = scalar_lea.hbm %s2428_s3, %s1248_s5  ;;  %s310_s6 = int_to_ptr.vmem [resolvable:$true] %s309_s6 }
  0x6a   : > { %s295_s9 = scalar_lea.sflag [#allocation10], %s294_s15  ;;  %p1818_p7 = pneg %p2212_p4 }
  0x6b   : > { %s1829_s26 = scalar_lea.vmem %s310_s6, 512  ;;  %s1986_s27 = smov [#allocation9]  }
  0x6c   : > { %p1830_p9 = scmp.ne.s32.totalorder %s310_s6, %s1829_s26  ;;  %s1834_s28 = sshll.u32 %s1986_s27, 4  ;;  %s1835_s28 = int_to_ptr.vmem [resolvable:$false] %s1834_s28 }
  0x6d   : > { %s1836_s10 = scalar_lea.vmem %s1835_s28, 1024  ;;  %p1837_p8 = scmp.lt.s32.totalorder %s310_s6, %s1835_s28 }
  0x6e   : > { %p1832_p13 = pnand %p1830_p9, %p1818_p7  ;;  %p1838_p12 = scmp.lt.s32.totalorder %s1836_s10, %s1829_s26 }
  0x70   : > { %p1833_p2 = pneg %p1832_p13  ;;  %p1839_p6 = por %p1838_p12, %p1837_p8 }
  0x72   : > { %p1840_p10 = pnand %p1839_p6, %p1833_p2 }
  0x74   : > { %1843 = shalt.err (!%p1840_p10)
}
  0x75   : > { %s1987_s13 = smov 512   ;;  %321 = sbr.rel (%p2110_p11) target bundleno = 885 (0x375), region = 44 }
  0x76   : > { %1598 = dma.hbm_to_vmem [thread:$0]  (!%p2212_p4), %s308_s1, 512, %s310_s6, %s295_s9, %s1987_s13, %s2481_s21, %s2480_s17  }
  0x77   : > { %s2239_s0 = sand.u32 (!%p2110_p11), 1, %s1952_s25  }
  0x78   : > { %s1250_s15 = sshll.u32 (!%p2110_p11), %s2239_s0, 7  ;;  %s324_s26 = scalar_lea.sflag (!%p2110_p11), [#allocation4], %s2239_s0 }
  0x79   : > { %s2243_s24 = scalar_lea.vmem (!%p2110_p11), [#allocation3], %s1250_s15 }
  0x7a   : > { %1915 = dma.done.wait (%p2092_p3), %s324_s26, 2048  }
  0x7b   : > { %1917 = vsyncadd (%p2092_p3), %s324_s26, 4294965248  ;;  %p2482_p4 = scmp.eq.s32.totalorder %s2081_s8, 0 }
  0x7d   : > { %1919 = dma.done.wait (%p2482_p4), [#allocation7], 8256   ;;  %p2483_p11 = pmov %p2482_p4 }
  0x7e   : > { %s340_s1 = sand.u32 1, %s2081_s8   ;;  %s342_s14 = sand.u32 1, %s1940_s22  }
  0x7f   : > { %1921 = vsyncadd (%p2483_p11), [#allocation7], 4294959040  ;;  %s1253_s2 = sshll.u32 %s342_s14, 5  ;;  %s341_s17 = scalar_lea.sflag [#allocation10], %s340_s1 }
  0x80   : > { %s2255_s21 = scalar_lea.vmem [#allocation9], %s1253_s2  ;;  %p2484_p5 = scmp.ne.s32.totalorder %s2459_s12, 0 }
  0x82   : > { %1923 = dma.done.wait (%p2484_p5), %s341_s17, 512  }
  0x83   : > { %1925 = vsyncadd (%p2484_p5), %s341_s17, 4294966784  ;;  %p2485_p3 = pmov %p2482_p4 }
  0x85   : > { %1927 = dma.done.wait (%p2485_p3), [#allocation10], 2048   ;;  %p2486_p0 = pmov %p2485_p3 }
  0x86   : > { %s2265_s11 = scalar_lea.vmem [#allocation12], %s1250_s15  ;;  %s2487_s16 = sld [smem:[#allocation20_spill]] }
  0x87   : > { %1929 = vsyncadd (%p2486_p0), [#allocation10], 4294965248 }
  0x8c   : > { %p1256_p1 = scmp.ne.s32.totalorder %s2487_s16, 0 }
  0x8e   : > { %387 = sbr.rel (%p1256_p1) target bundleno = 156 (0x9c), region = 68 }
  0x93   : > { %v1988_v0 = vmov 0.0  }
  0x94   : > { %388 = vst [vmem:[#allocation2 + $0x30] sm:$0xff] %v1988_v0  ;;  %389 = vst [vmem:[#allocation2] sm:$0xff] %v1988_v0 }
  0x95   : > { %390 = vst [vmem:[#allocation2 + $0x58] sm:$0xff] %v1988_v0  ;;  %391 = vst [vmem:[#allocation2 + $0x18] sm:$0xff] %v1988_v0 }
  0x96   : > { %392 = vst [vmem:[#allocation2 + $0x50] sm:$0xff] %v1988_v0  ;;  %393 = vst [vmem:[#allocation2 + $0x68] sm:$0xff] %v1988_v0 }
  0x97   : > { %394 = vst [vmem:[#allocation2 + $0x8] sm:$0xff] %v1988_v0  ;;  %395 = vst [vmem:[#allocation2 + $0x48] sm:$0xff] %v1988_v0 }
  0x98   : > { %396 = vst [vmem:[#allocation2 + $0x40] sm:$0xff] %v1988_v0  ;;  %397 = vst [vmem:[#allocation2 + $0x20] sm:$0xff] %v1988_v0 }
  0x99   : > { %398 = vst [vmem:[#allocation2 + $0x10] sm:$0xff] %v1988_v0  ;;  %399 = vst [vmem:[#allocation2 + $0x38] sm:$0xff] %v1988_v0 }
  0x9a   : > { %400 = vst [vmem:[#allocation2 + $0x60] sm:$0xff] %v1988_v0  ;;  %401 = vst [vmem:[#allocation2 + $0x70] sm:$0xff] %v1988_v0 }
  0x9b   : > { %402 = vst [vmem:[#allocation2 + $0x78] sm:$0xff] %v1988_v0  ;;  %403 = vst [vmem:[#allocation2 + $0x28] sm:$0xff] %v1988_v0 }
  0x9c PF: > { %s2488_s8 = sld [smem:[#allocation20_spill]]  ;;  %v455_v1 = vld [vmem:[%s2243_s24 + $0x78] sm:$0xff]  ;;  %v454_v2 = vld [vmem:[%s2243_s24 + $0x70] sm:$0xff]  ;;  %v453_v3 = vld [vmem:[%s2243_s24 + $0x68] sm:$0xff] }
  0x9d   : > { %1364 = vmatprep.subr.mxu0 %v455_v1  ;;  %v452_v4 = vld [vmem:[%s2243_s24 + $0x60] sm:$0xff]  ;;  %v451_v6 = vld [vmem:[%s2243_s24 + $0x58] sm:$0xff]  ;;  %v450_v10 = vld [vmem:[%s2243_s24 + $0x50] sm:$0xff] }
  0x9e   : > { %1365 = vmatpush3.msra.mxu0 %v455_v1  ;;  %v2274_v5 = vld [vmem:[%s2255_s21] sm:$0xff]  ;;  %v447_v17 = vld [vmem:[%s2243_s24 + $0x38] sm:$0xff]  ;;  %v446_v19 = vld [vmem:[%s2243_s24 + $0x30] sm:$0xff] }
  0x9f   : > { %1366 = vmatprep.subr.mxu0 %v454_v2  ;;  %v408_v7 = vunpack.c.0.s8 %v2274_v5  ;;  %v449_v13 = vld [vmem:[%s2243_s24 + $0x48] sm:$0xff]  ;;  %v448_v15 = vld [vmem:[%s2243_s24 + $0x40] sm:$0xff]  ;;  %v443_v25 = vld [vmem:[%s2243_s24 + $0x18] sm:$0xff]  ;;  %v409_v28 = vunpack.c.1.s8 %v2274_v5  ;;  %v410_v31 = vunpack.c.2.s8 %v2274_v5  ;;  %v411_v36 = vunpack.c.3.s8 %v2274_v5 }
  0xa0   : > { %1367 = vmatpush3.msra.mxu0 %v454_v2  ;;  %v445_v21 = vld [vmem:[%s2243_s24 + $0x28] sm:$0xff]  ;;  %v444_v23 = vld [vmem:[%s2243_s24 + $0x20] sm:$0xff]  ;;  %v442_v27 = vld [vmem:[%s2243_s24 + $0x10] sm:$0xff] }
  0xa1   : > { %1368 = vmatprep.subr.mxu0 %v453_v3  ;;  %v2283_v11 = vcvt.s32.f32 %v408_v7  ;;  %v441_v30 = vld [vmem:[%s2243_s24 + $0x8] sm:$0xff]  ;;  %v440_v34 = vld [vmem:[%s2243_s24] sm:$0xff]  ;;  %v425_v35 = vcvt.s32.f32 %v409_v28  ;;  %v426_v38 = vcvt.s32.f32 %v410_v31  ;;  %v427_v41 = vcvt.s32.f32 %v411_v36  ;;  %v406_v45 = vld [vmem:[%s2255_s21 + $0x10] sm:$0xff] }
  0xa2   : > { %s1257_s12 = sshll.u32 %s2488_s8, 7  ;;  %1369 = vmatpush3.msra.mxu0 %v453_v3  ;;  %v405_v32 = vld [vmem:[%s2255_s21 + $0x8] sm:$0xff]  ;;  %v416_v49 = vunpack.c.0.s8 %v406_v45  ;;  %v417_v51 = vunpack.c.1.s8 %v406_v45  ;;  %v418_v53 = vunpack.c.2.s8 %v406_v45  ;;  %v407_v54 = vld [vmem:[%s2255_s21 + $0x18] sm:$0xff]  ;;  %v419_v56 = vunpack.c.3.s8 %v406_v45  ;;  %s667_s5 = scalar_lea.vmem [#allocation8], %s2488_s8 }
  0xa3   : > { %s2278_s19 = scalar_lea.vmem [#allocation6], %s1257_s12  ;;  %1370 = vmatprep.subr.mxu0 %v452_v4  ;;  %1396 = vmatprep.mubr.f32.mxu0 %v2283_v11  ;;  %v412_v39 = vunpack.c.0.s8 %v405_v32  ;;  %v413_v42 = vunpack.c.1.s8 %v405_v32  ;;  %v414_v44 = vunpack.c.2.s8 %v405_v32  ;;  %v415_v47 = vunpack.c.3.s8 %v405_v32  ;;  %v634_v31 = vld [vmem:[#allocation2] sm:$0xff]  ;;  %v633_v36 = vld [vmem:[#allocation2 + $0x30] sm:$0xff]  ;;  %p1259_p7 = scmp.ne.s32.totalorder %s2488_s8, 3 }
  0xa4   : > { %v666_v8 = vld [vmem:[%s2278_s19 + $0x78] sm:$0xff]  ;;  %v665_v9 = vld [vmem:[%s2278_s19 + $0x70] sm:$0xff]  ;;  %1371 = vmatpush3.msra.mxu0 %v452_v4  ;;  %v664_v12 = vld [vmem:[%s2278_s19 + $0x68] sm:$0xff]  ;;  %601 = vadd.xlane.f32.xlu0 %v2283_v11  ;;  %v432_v52 = vcvt.s32.f32 %v416_v49  ;;  %v433_v55 = vcvt.s32.f32 %v417_v51  ;;  %v434_v57 = vcvt.s32.f32 %v418_v53  ;;  %v420_v58 = vunpack.c.0.s8 %v407_v54  ;;  %s2489_s20 = sld [smem:[#allocation31_spill]] (!%p1259_p7) }
  0xa5   : > { %1420 = vmatprep.subr.mxu1 %v666_v8  ;;  %1372 = vmatprep.subr.mxu0 %v451_v6  ;;  %v663_v14 = vld [vmem:[%s2278_s19 + $0x60] sm:$0xff]  ;;  %v662_v16 = vld [vmem:[%s2278_s19 + $0x58] sm:$0xff]  ;;  %v661_v18 = vld [vmem:[%s2278_s19 + $0x50] sm:$0xff]  ;;  %v428_v43 = vcvt.s32.f32 %v412_v39  ;;  %v429_v46 = vcvt.s32.f32 %v413_v42  ;;  %v430_v48 = vcvt.s32.f32 %v414_v44  ;;  %v431_v50 = vcvt.s32.f32 %v415_v47 }
  0xa6   : > { %1421 = vmatpush3.msra.mxu1 %v666_v8  ;;  %1373 = vmatpush3.msra.mxu0 %v451_v6  ;;  %v660_v20 = vld [vmem:[%s2278_s19 + $0x48] sm:$0xff]  ;;  %v659_v22 = vld [vmem:[%s2278_s19 + $0x40] sm:$0xff]  ;;  %v658_v24 = vld [vmem:[%s2278_s19 + $0x38] sm:$0xff]  ;;  %v435_v59 = vcvt.s32.f32 %v419_v56  ;;  %v421_v60 = vunpack.c.1.s8 %v407_v54  ;;  %v436_v61 = vcvt.s32.f32 %v420_v58  ;;  %v422_v62 = vunpack.c.2.s8 %v407_v54 }
  0xa7   : > { %1422 = vmatprep.subr.mxu1 %v665_v9  ;;  %1374 = vmatprep.subr.mxu0 %v450_v10  ;;  %v657_v26 = vld [vmem:[%s2278_s19 + $0x30] sm:$0xff]  ;;  %v656_v29 = vld [vmem:[%s2278_s19 + $0x28] sm:$0xff]  ;;  %v655_v33 = vld [vmem:[%s2278_s19 + $0x20] sm:$0xff]  ;;  %v423_v0 = vunpack.c.3.s8 %v407_v54 }
  0xa8   : > { %1423 = vmatpush3.msra.mxu1 %v665_v9  ;;  %1375 = vmatpush3.msra.mxu0 %v450_v10  ;;  %v654_v37 = vld [vmem:[%s2278_s19 + $0x18] sm:$0xff]  ;;  %v653_v40 = vld [vmem:[%s2278_s19 + $0x10] sm:$0xff]  ;;  %v437_v63 = vcvt.s32.f32 %v421_v60  ;;  %v438_v1 = vcvt.s32.f32 %v422_v62  ;;  %v652_v3 = vld [vmem:[%s2278_s19 + $0x8] sm:$0xff] }
  0xa9   : > { %1424 = vmatprep.subr.mxu1 %v664_v12  ;;  %1376 = vmatprep.subr.mxu0 %v449_v13  ;;  %v439_v2 = vcvt.s32.f32 %v423_v0  ;;  %v651_v4 = vld [vmem:[%s2278_s19] sm:$0xff]  ;;  %v635_v47 = vld [vmem:[#allocation2 + $0x58] sm:$0xff]  ;;  %v638_v53 = vld [vmem:[#allocation2 + $0x68] sm:$0xff] }
  0xaa   : > { %1425 = vmatpush3.msra.mxu1 %v664_v12  ;;  %1377 = vmatpush3.msra.mxu0 %v449_v13  ;;  %v637_v58 = vld [vmem:[#allocation2 + $0x50] sm:$0xff]  ;;  %v640_v0 = vld [vmem:[#allocation2 + $0x48] sm:$0xff] }
  0xab   : > { %1426 = vmatprep.subr.mxu1 %v663_v14  ;;  %1378 = vmatprep.subr.mxu0 %v448_v15 }
  0xac   : > { %1427 = vmatpush3.msra.mxu1 %v663_v14  ;;  %1379 = vmatpush3.msra.mxu0 %v448_v15 }
  0xad   : > { %1428 = vmatprep.subr.mxu1 %v662_v16  ;;  %1380 = vmatprep.subr.mxu0 %v447_v17 }
  0xae   : > { %1429 = vmatpush3.msra.mxu1 %v662_v16  ;;  %1381 = vmatpush3.msra.mxu0 %v447_v17 }
  0xaf   : > { %1430 = vmatprep.subr.mxu1 %v661_v18  ;;  %1382 = vmatprep.subr.mxu0 %v446_v19 }
  0xb0   : > { %1431 = vmatpush3.msra.mxu1 %v661_v18  ;;  %1383 = vmatpush3.msra.mxu0 %v446_v19 }
  0xb1   : > { %1432 = vmatprep.subr.mxu1 %v660_v20  ;;  %1384 = vmatprep.subr.mxu0 %v445_v21 }
  0xb2   : > { %1433 = vmatpush3.msra.mxu1 %v660_v20  ;;  %1385 = vmatpush3.msra.mxu0 %v445_v21 }
  0xb3   : > { %1434 = vmatprep.subr.mxu1 %v659_v22  ;;  %1386 = vmatprep.subr.mxu0 %v444_v23 }
  0xb4   : > { %1435 = vmatpush3.msra.mxu1 %v659_v22  ;;  %1387 = vmatpush3.msra.mxu0 %v444_v23 }
  0xb5   : > { %1436 = vmatprep.subr.mxu1 %v658_v24  ;;  %1388 = vmatprep.subr.mxu0 %v443_v25 }
  0xb6   : > { %1437 = vmatpush3.msra.mxu1 %v658_v24  ;;  %1389 = vmatpush3.msra.mxu0 %v443_v25 }
  0xb7   : > { %1438 = vmatprep.subr.mxu1 %v657_v26  ;;  %1390 = vmatprep.subr.mxu0 %v442_v27 }
  0xb8   : > { %1439 = vmatpush3.msra.mxu1 %v657_v26  ;;  %1391 = vmatpush3.msra.mxu0 %v442_v27  ;;  %v2318_v26 = vld [vmem:[%s667_s5] ss:$0 sm:$0xff] }
  0xb9   : > { %1440 = vmatprep.subr.mxu1 %v656_v29  ;;  %1392 = vmatprep.subr.mxu0 %v441_v30 }
  0xba   : > { %1441 = vmatpush3.msra.mxu1 %v656_v29  ;;  %1393 = vmatpush3.msra.mxu0 %v441_v30 }
  0xbb   : > { %1442 = vmatprep.subr.mxu1 %v655_v33  ;;  %1394 = vmatprep.subr.mxu0 %v440_v34 }
  0xbc   : > { %1443 = vmatpush3.msra.mxu1 %v655_v33  ;;  %1395 = vmatpush3.msra.mxu0 %v440_v34 }
  0xbd   : > { %1444 = vmatprep.subr.mxu1 %v654_v37  ;;  %1397 = vmatmul.mubr.f32.vlgmr.msra.gmra.mxu0 %v425_v35 }
  0xbe   : > { %1445 = vmatpush3.msra.mxu1 %v654_v37  ;;  %1399 = vmatprep.mubr.f32.mxu0 %v426_v38 }
  0xbf   : > { %1446 = vmatprep.subr.mxu1 %v653_v40  ;;  %605 = vadd.xlane.f32.xlu1 %v426_v38 }
  0xc0   : > { %1447 = vmatpush3.msra.mxu1 %v653_v40  ;;  %603 = vadd.xlane.f32.xlu0 %v425_v35  ;;  %v636_v40 = vld [vmem:[#allocation2 + $0x18] sm:$0xff] }
  0xc1   : > { %1400 = vmatmul.mubr.f32.gmra.mxu0 %v427_v41  ;;  %1448 = vmatprep.subr.mxu1 %v652_v3 }
  0xc2   : > { %1402 = vmatprep.mubr.f32.mxu0 %v428_v43  ;;  %1449 = vmatpush3.msra.mxu1 %v652_v3 }
  0xc3   : > { %607 = vadd.xlane.f32.xlu1 %v427_v41  ;;  %1450 = vmatprep.subr.mxu1 %v651_v4 }
  0xc4   : > { %609 = vadd.xlane.f32.xlu0 %v428_v43  ;;  %1451 = vmatpush3.msra.mxu1 %v651_v4 }
  0xc5   : > { %1403 = vmatmul.mubr.f32.gmra.mxu0 %v429_v46 }
  0xc6   : > { %1405 = vmatprep.mubr.f32.mxu0 %v430_v48 }
  0xc7   : > { %611 = vadd.xlane.f32.xlu1 %v429_v46 }
  0xc8   : > { %613 = vadd.xlane.f32.xlu0 %v430_v48 }
  0xc9   : > { %1406 = vmatmul.mubr.f32.gmra.mxu0 %v431_v50 }
  0xca   : > { %1408 = vmatprep.mubr.f32.mxu0 %v432_v52 }
  0xcb   : > { %615 = vadd.xlane.f32.xlu1 %v431_v50 }
  0xcc   : > { %617 = vadd.xlane.f32.xlu0 %v432_v52 }
  0xcd   : > { %1409 = vmatmul.mubr.f32.gmra.mxu0 %v433_v55 }
  0xce   : > { %1411 = vmatprep.mubr.f32.mxu0 %v434_v57 }
  0xcf   : > { %619 = vadd.xlane.f32.xlu1 %v433_v55 }
  0xd0   : > { %621 = vadd.xlane.f32.xlu0 %v434_v57 }
  0xd1   : > { %1412 = vmatmul.mubr.f32.gmra.mxu0 %v435_v59 }
  0xd2   : > { %1414 = vmatprep.mubr.f32.mxu0 %v436_v61 }
  0xd3   : > { %623 = vadd.xlane.f32.xlu1 %v435_v59 }
  0xd4   : > { %625 = vadd.xlane.f32.xlu0 %v436_v61 }
  0xd5   : > { %1415 = vmatmul.mubr.f32.gmra.mxu0 %v437_v63 }
  0xd6   : > { %1417 = vmatprep.mubr.f32.mxu0 %v438_v1 }
  0xd7   : > { %627 = vadd.xlane.f32.xlu1 %v437_v63 }
  0xd8   : > { %629 = vadd.xlane.f32.xlu0 %v438_v1 }
  0xd9   : > { %1418 = vmatmul.mubr.f32.gmra.mxu0 %v439_v2 }
  0xdb   : > { %631 = vadd.xlane.f32.xlu1 %v439_v2 }
 0x12d   : > { %v602_v22 = vpop.xlane.xlu0 %601 }
 0x12e   : > { %v675_v30 = vmul.f32 %v2318_v26, %v602_v22 }
 0x148   : > { %v606_v21 = vpop.xlane.xlu1 %605 }
 0x149   : > { %v604_v24 = vpop.xlane.xlu0 %603  ;;  %v677_v43 = vmul.f32 %v2318_v26, %v606_v21 }
 0x14a   : > { %v676_v28 = vmul.f32 %v2318_v26, %v604_v24 }
 0x14c   : > { %v608_v23 = vpop.xlane.xlu1 %607 }
 0x14d   : > { %v610_v27 = vpop.xlane.xlu0 %609  ;;  %v678_v35 = vmul.f32 %v2318_v26, %v608_v23  ;;  %v644_v23 = vld [vmem:[#allocation2 + $0x38] sm:$0xff] }
 0x14e   : > { %v679_v52 = vmul.f32 %v2318_v26, %v610_v27 }
 0x150   : > { %v612_v25 = vpop.xlane.xlu1 %611 }
 0x151   : > { %v614_v33 = vpop.xlane.xlu0 %613  ;;  %v680_v46 = vmul.f32 %v2318_v26, %v612_v25 }
 0x152   : > { %v681_v63 = vmul.f32 %v2318_v26, %v614_v33 }
 0x154   : > { %v616_v29 = vpop.xlane.xlu1 %615 }
 0x155   : > { %v618_v49 = vpop.xlane.xlu0 %617  ;;  %v682_v57 = vmul.f32 %v2318_v26, %v616_v29  ;;  %v643_v29 = vld [vmem:[#allocation2 + $0x10] sm:$0xff] }
 0x158   : > { %v620_v42 = vpop.xlane.xlu1 %619 }
 0x159   : > { %v622_v2 = vpop.xlane.xlu0 %621 }
 0x15a   : > { %v685_v22 = vmul.f32 %v2318_v26, %v622_v2 }
 0x15c   : > { %v624_v60 = vpop.xlane.xlu1 %623 }
 0x17d   : > { %v1398_v5 = vpop.f32.mrf.mxu0 }
 0x17f   : > { %v522_v6 = vpop.f32.mrf.mxu0 }
 0x180   : > { %1452 = vmatprep.mubr.f32.mxu1 %v522_v6  ;;  %v639_v6 = vld [vmem:[#allocation2 + $0x8] sm:$0xff] }
 0x181   : > { %v1401_v7 = vpop.f32.mrf.mxu0  ;;  %1453 = vmatmul.mubr.f32.vlgmr.msra.gmra.mxu1 %v1398_v5  ;;  %v684_v5 = vmul.f32 %v2318_v26, %v620_v42 }
 0x183   : > { %v532_v8 = vpop.f32.mrf.mxu0 }
 0x184   : > { %1455 = vmatprep.mubr.f32.mxu1 %v532_v8 }
 0x185   : > { %v1404_v9 = vpop.f32.mrf.mxu0  ;;  %1456 = vmatmul.mubr.f32.gmra.mxu1 %v1401_v7 }
 0x187   : > { %v542_v10 = vpop.f32.mrf.mxu0 }
 0x188   : > { %1458 = vmatprep.mubr.f32.mxu1 %v542_v10  ;;  %v683_v10 = vmul.f32 %v2318_v26, %v618_v49 }
 0x189   : > { %v1407_v11 = vpop.f32.mrf.mxu0  ;;  %1459 = vmatmul.mubr.f32.gmra.mxu1 %v1404_v9 }
 0x18b   : > { %v552_v12 = vpop.f32.mrf.mxu0 }
 0x18c   : > { %1461 = vmatprep.mubr.f32.mxu1 %v552_v12 }
 0x18d   : > { %v1410_v13 = vpop.f32.mrf.mxu0  ;;  %1462 = vmatmul.mubr.f32.gmra.mxu1 %v1407_v11  ;;  %v642_v11 = vld [vmem:[#allocation2 + $0x20] sm:$0xff] }
 0x18f   : > { %v562_v14 = vpop.f32.mrf.mxu0 }
 0x190   : > { %1464 = vmatprep.mubr.f32.mxu1 %v562_v14 }
 0x191   : > { %v1413_v15 = vpop.f32.mrf.mxu0  ;;  %1465 = vmatmul.mubr.f32.gmra.mxu1 %v1410_v13  ;;  %v628_v13 = vpop.xlane.xlu1 %627 }
 0x193   : > { %v572_v16 = vpop.f32.mrf.mxu0 }
 0x194   : > { %1467 = vmatprep.mubr.f32.mxu1 %v572_v16  ;;  %v686_v16 = vmul.f32 %v2318_v26, %v624_v60 }
 0x195   : > { %v1416_v17 = vpop.f32.mrf.mxu0  ;;  %1468 = vmatmul.mubr.f32.gmra.mxu1 %v1413_v15 }
 0x197   : > { %v582_v18 = vpop.f32.mrf.mxu0 }
 0x198   : > { %1470 = vmatprep.mubr.f32.mxu1 %v582_v18 }
 0x199   : > { %v1419_v19 = vpop.f32.mrf.mxu0  ;;  %1471 = vmatmul.mubr.f32.gmra.mxu1 %v1416_v17  ;;  %v641_v17 = vld [vmem:[#allocation2 + $0x40] sm:$0xff] }
 0x19b   : > { %v592_v20 = vpop.f32.mrf.mxu0 }
 0x19c   : > { %1473 = vmatprep.mubr.f32.mxu1 %v592_v20 }
 0x19d   : > { %1474 = vmatmul.mubr.f32.gmra.mxu1 %v1419_v19  ;;  %v626_v19 = vpop.xlane.xlu0 %625 }
 0x241   : > { %v1454_v32 = vpop.f32.mrf.mxu1 }
 0x242   : > { %v763_v34 = vadd.f32 %v1454_v32, %v676_v28  ;;  %v688_v28 = vmul.f32 %v2318_v26, %v628_v13 }
 0x243   : > { %v757_v37 = vpop.f32.mrf.mxu1 }
 0x244   : > { %v837_v38 = vadd.f32 %v763_v34, %v634_v31  ;;  %v758_v39 = vadd.f32 %v757_v37, %v675_v30  ;;  %v632_v31 = vpop.xlane.xlu1 %631  ;;  %v687_v34 = vmul.f32 %v2318_v26, %v626_v19  ;;  %v630_v37 = vpop.xlane.xlu0 %629 }
 0x245   : > { %v1457_v41 = vpop.f32.mrf.mxu1 }
 0x246   : > { %853 = vst [vmem:[#allocation2] sm:$0xff] %v837_v38  ;;  %v836_v44 = vadd.f32 %v758_v39, %v633_v36  ;;  %v773_v45 = vadd.f32 %v1457_v41, %v678_v35  ;;  %v646_v35 = vld [vmem:[#allocation2 + $0x70] sm:$0xff]  ;;  %v645_v41 = vld [vmem:[#allocation2 + $0x60] sm:$0xff] }
 0x247   : > { %v767_v48 = vpop.f32.mrf.mxu1 }
 0x248   : > { %852 = vst [vmem:[#allocation2 + $0x30] sm:$0xff] %v836_v44  ;;  %v839_v50 = vadd.f32 %v773_v45, %v636_v40  ;;  %v768_v51 = vadd.f32 %v767_v48, %v677_v43  ;;  %v690_v40 = vmul.f32 %v2318_v26, %v632_v31  ;;  %v689_v45 = vmul.f32 %v2318_v26, %v630_v37 }
 0x249   : > { %v1460_v54 = vpop.f32.mrf.mxu1 }
 0x24a   : > { %855 = vst [vmem:[#allocation2 + $0x18] sm:$0xff] %v839_v50  ;;  %v838_v55 = vadd.f32 %v768_v51, %v635_v47  ;;  %v783_v56 = vadd.f32 %v1460_v54, %v680_v46  ;;  %v648_v46 = vld [vmem:[#allocation2 + $0x28] sm:$0xff]  ;;  %v647_v50 = vld [vmem:[#allocation2 + $0x78] sm:$0xff] }
 0x24b   : > { %v777_v59 = vpop.f32.mrf.mxu1 }
 0x24c   : > { %854 = vst [vmem:[#allocation2 + $0x58] sm:$0xff] %v838_v55  ;;  %v841_v61 = vadd.f32 %v783_v56, %v638_v53  ;;  %v778_v62 = vadd.f32 %v777_v59, %v679_v52 }
 0x24d   : > { %v1463_v1 = vpop.f32.mrf.mxu1 }
 0x24e   : > { %857 = vst [vmem:[#allocation2 + $0x68] sm:$0xff] %v841_v61  ;;  %v840_v3 = vadd.f32 %v778_v62, %v637_v58  ;;  %v793_v4 = vadd.f32 %v1463_v1, %v682_v57 }
 0x24f   : > { %v787_v7 = vpop.f32.mrf.mxu1 }
 0x250   : > { %856 = vst [vmem:[#allocation2 + $0x50] sm:$0xff] %v840_v3  ;;  %v843_v8 = vadd.f32 %v793_v4, %v640_v0  ;;  %v788_v9 = vadd.f32 %v787_v7, %v681_v63 }
 0x251   : > { %v1466_v12 = vpop.f32.mrf.mxu1 }
 0x252   : > { %859 = vst [vmem:[#allocation2 + $0x48] sm:$0xff] %v843_v8  ;;  %v842_v14 = vadd.f32 %v788_v9, %v639_v6  ;;  %v803_v15 = vadd.f32 %v1466_v12, %v684_v5 }
 0x253   : > { %v797_v18 = vpop.f32.mrf.mxu1 }
 0x254   : > { %858 = vst [vmem:[#allocation2 + $0x8] sm:$0xff] %v842_v14  ;;  %v845_v20 = vadd.f32 %v803_v15, %v642_v11  ;;  %v798_v21 = vadd.f32 %v797_v18, %v683_v10 }
 0x255   : > { %v1469_v24 = vpop.f32.mrf.mxu1 }
 0x256   : > { %861 = vst [vmem:[#allocation2 + $0x20] sm:$0xff] %v845_v20  ;;  %v844_v25 = vadd.f32 %v798_v21, %v641_v17  ;;  %v813_v27 = vadd.f32 %v1469_v24, %v686_v16 }
 0x257   : > { %v807_v30 = vpop.f32.mrf.mxu1 }
 0x258   : > { %860 = vst [vmem:[#allocation2 + $0x40] sm:$0xff] %v844_v25  ;;  %v847_v32 = vadd.f32 %v813_v27, %v644_v23  ;;  %v808_v33 = vadd.f32 %v807_v30, %v685_v22 }
 0x259   : > { %v1472_v36 = vpop.f32.mrf.mxu1 }
 0x25a   : > { %863 = vst [vmem:[#allocation2 + $0x38] sm:$0xff] %v847_v32  ;;  %v846_v38 = vadd.f32 %v808_v33, %v643_v29  ;;  %v823_v39 = vadd.f32 %v1472_v36, %v688_v28 }
 0x25b   : > { %v817_v42 = vpop.f32.mrf.mxu1 }
 0x25c   : > { %862 = vst [vmem:[#allocation2 + $0x10] sm:$0xff] %v846_v38  ;;  %v849_v43 = vadd.f32 %v823_v39, %v646_v35  ;;  %v818_v44 = vadd.f32 %v817_v42, %v687_v34 }
 0x25d   : > { %v1475_v47 = vpop.f32.mrf.mxu1 }
 0x25e   : > { %865 = vst [vmem:[#allocation2 + $0x70] sm:$0xff] %v849_v43  ;;  %v848_v48 = vadd.f32 %v818_v44, %v645_v41  ;;  %v833_v49 = vadd.f32 %v1475_v47, %v690_v40 }
 0x25f   : > { %v827_v51 = vpop.f32.mrf.mxu1 }
 0x260   : > { %864 = vst [vmem:[#allocation2 + $0x60] sm:$0xff] %v848_v48  ;;  %v851_v52 = vadd.f32 %v833_v49, %v648_v46  ;;  %v828_v53 = vadd.f32 %v827_v51, %v689_v45  ;;  %871 = sbr.rel (%p1259_p7) target bundleno = 857 (0x359), region = 72 }
 0x262   : > { %867 = vst [vmem:[#allocation2 + $0x28] sm:$0xff] %v851_v52  ;;  %v850_v54 = vadd.f32 %v828_v53, %v647_v50 }
 0x264   : > { %866 = vst [vmem:[#allocation2 + $0x78] sm:$0xff] %v850_v54 }
 0x265   : > { %v903_v55 = vld [vmem:[#allocation11 + $0x78] sm:$0xff]  ;;  %v902_v56 = vld [vmem:[#allocation11 + $0x70] sm:$0xff]  ;;  %v901_v26 = vld [vmem:[#allocation11 + $0x68] sm:$0xff] }
 0x266   : > { %1476 = vmatprep.subr.mxu0 %v903_v55  ;;  %1532 = vmatprep.subr.mxu1 %v903_v55  ;;  %v900_v57 = vld [vmem:[#allocation11 + $0x60] sm:$0xff]  ;;  %v899_v58 = vld [vmem:[#allocation11 + $0x58] sm:$0xff]  ;;  %v898_v59 = vld [vmem:[#allocation11 + $0x50] sm:$0xff] }
 0x267   : > { %1477 = vmatpush3.msra.mxu0 %v903_v55  ;;  %1548 = vmatpush3.msra.mxu1 %v903_v55  ;;  %v897_v60 = vld [vmem:[#allocation11 + $0x48] sm:$0xff]  ;;  %v896_v61 = vld [vmem:[#allocation11 + $0x40] sm:$0xff]  ;;  %v895_v62 = vld [vmem:[#allocation11 + $0x38] sm:$0xff] }
 0x268   : > { %1478 = vmatprep.subr.mxu0 %v902_v56  ;;  %1533 = vmatprep.subr.mxu1 %v902_v56  ;;  %v894_v63 = vld [vmem:[#allocation11 + $0x30] sm:$0xff]  ;;  %v893_v0 = vld [vmem:[#allocation11 + $0x28] sm:$0xff]  ;;  %v892_v1 = vld [vmem:[#allocation11 + $0x20] sm:$0xff] }
 0x269   : > { %1479 = vmatpush3.msra.mxu0 %v902_v56  ;;  %1549 = vmatpush3.msra.mxu1 %v902_v56  ;;  %v891_v2 = vld [vmem:[#allocation11 + $0x18] sm:$0xff]  ;;  %v890_v3 = vld [vmem:[#allocation11 + $0x10] sm:$0xff]  ;;  %v889_v4 = vld [vmem:[#allocation11 + $0x8] sm:$0xff] }
 0x26a   : > { %1480 = vmatprep.subr.mxu0 %v901_v26  ;;  %1534 = vmatprep.subr.mxu1 %v901_v26  ;;  %v888_v5 = vld [vmem:[#allocation11] sm:$0xff]  ;;  %v872_v6 = vld [vmem:[#allocation2 + $0x30] sm:$0xff]  ;;  %v874_v10 = vld [vmem:[#allocation2 + $0x58] sm:$0xff] }
 0x26b   : > { %1481 = vmatpush3.msra.mxu0 %v901_v26  ;;  %1550 = vmatpush3.msra.mxu1 %v901_v26  ;;  %v880_v7 = vld [vmem:[#allocation2 + $0x40] sm:$0xff]  ;;  %v882_v11 = vld [vmem:[#allocation2 + $0x10] sm:$0xff]  ;;  %v875_v12 = vld [vmem:[#allocation2 + $0x18] sm:$0xff] }
 0x26c   : > { %1482 = vmatprep.subr.mxu0 %v900_v57  ;;  %1535 = vmatprep.subr.mxu1 %v900_v57  ;;  %v873_v8 = vld [vmem:[#allocation2] sm:$0xff]  ;;  %v883_v13 = vld [vmem:[#allocation2 + $0x38] sm:$0xff]  ;;  %v876_v14 = vld [vmem:[#allocation2 + $0x50] sm:$0xff] }
 0x26d   : > { %1483 = vmatpush3.msra.mxu0 %v900_v57  ;;  %1551 = vmatpush3.msra.mxu1 %v900_v57  ;;  %v881_v9 = vld [vmem:[#allocation2 + $0x20] sm:$0xff]  ;;  %v877_v16 = vld [vmem:[#allocation2 + $0x68] sm:$0xff]  ;;  %v885_v17 = vld [vmem:[#allocation2 + $0x70] sm:$0xff] }
 0x26e   : > { %1484 = vmatprep.subr.mxu0 %v899_v58  ;;  %1536 = vmatprep.subr.mxu1 %v899_v58  ;;  %v884_v15 = vld [vmem:[#allocation2 + $0x60] sm:$0xff]  ;;  %v878_v18 = vld [vmem:[#allocation2 + $0x8] sm:$0xff]  ;;  %v886_v19 = vld [vmem:[#allocation2 + $0x78] sm:$0xff] }
 0x26f   : > { %1485 = vmatpush3.msra.mxu0 %v899_v58  ;;  %1552 = vmatpush3.msra.mxu1 %v899_v58  ;;  %v879_v20 = vld [vmem:[#allocation2 + $0x48] sm:$0xff]  ;;  %v1260_v22 = vld [vmem:[%s2489_s20] ss:$0 sm:$0xff] }
 0x270   : > { %1486 = vmatprep.subr.mxu0 %v898_v59  ;;  %1537 = vmatprep.subr.mxu1 %v898_v59  ;;  %v887_v21 = vld [vmem:[#allocation2 + $0x28] sm:$0xff] }
 0x271   : > { %1487 = vmatpush3.msra.mxu0 %v898_v59  ;;  %1553 = vmatpush3.msra.mxu1 %v898_v59 }
 0x272   : > { %1488 = vmatprep.subr.mxu0 %v897_v60  ;;  %1538 = vmatprep.subr.mxu1 %v897_v60 }
 0x273   : > { %1489 = vmatpush3.msra.mxu0 %v897_v60  ;;  %1554 = vmatpush3.msra.mxu1 %v897_v60 }
 0x274   : > { %1490 = vmatprep.subr.mxu0 %v896_v61  ;;  %1539 = vmatprep.subr.mxu1 %v896_v61 }
 0x275   : > { %1491 = vmatpush3.msra.mxu0 %v896_v61  ;;  %1555 = vmatpush3.msra.mxu1 %v896_v61 }
 0x276   : > { %1492 = vmatprep.subr.mxu0 %v895_v62  ;;  %1540 = vmatprep.subr.mxu1 %v895_v62 }
 0x277   : > { %1493 = vmatpush3.msra.mxu0 %v895_v62  ;;  %1556 = vmatpush3.msra.mxu1 %v895_v62 }
 0x278   : > { %1494 = vmatprep.subr.mxu0 %v894_v63  ;;  %1541 = vmatprep.subr.mxu1 %v894_v63 }
 0x279   : > { %1495 = vmatpush3.msra.mxu0 %v894_v63  ;;  %1557 = vmatpush3.msra.mxu1 %v894_v63 }
 0x27a   : > { %1496 = vmatprep.subr.mxu0 %v893_v0  ;;  %1542 = vmatprep.subr.mxu1 %v893_v0 }
 0x27b   : > { %1497 = vmatpush3.msra.mxu0 %v893_v0  ;;  %1558 = vmatpush3.msra.mxu1 %v893_v0 }
 0x27c   : > { %1498 = vmatprep.subr.mxu0 %v892_v1  ;;  %1543 = vmatprep.subr.mxu1 %v892_v1 }
 0x27d   : > { %1499 = vmatpush3.msra.mxu0 %v892_v1  ;;  %1559 = vmatpush3.msra.mxu1 %v892_v1 }
 0x27e   : > { %1500 = vmatprep.subr.mxu0 %v891_v2  ;;  %1544 = vmatprep.subr.mxu1 %v891_v2 }
 0x27f   : > { %1501 = vmatpush3.msra.mxu0 %v891_v2  ;;  %1560 = vmatpush3.msra.mxu1 %v891_v2 }
 0x280   : > { %1502 = vmatprep.subr.mxu0 %v890_v3  ;;  %1545 = vmatprep.subr.mxu1 %v890_v3 }
 0x281   : > { %1503 = vmatpush3.msra.mxu0 %v890_v3  ;;  %1561 = vmatpush3.msra.mxu1 %v890_v3 }
 0x282   : > { %1504 = vmatprep.subr.mxu0 %v889_v4  ;;  %1546 = vmatprep.subr.mxu1 %v889_v4 }
 0x283   : > { %1505 = vmatpush3.msra.mxu0 %v889_v4  ;;  %1562 = vmatpush3.msra.mxu1 %v889_v4 }
 0x284   : > { %1506 = vmatprep.subr.mxu0 %v888_v5  ;;  %1547 = vmatprep.subr.mxu1 %v888_v5 }
 0x285   : > { %1507 = vmatpush3.msra.mxu0 %v888_v5  ;;  %1563 = vmatpush3.msra.mxu1 %v888_v5 }
 0x286   : > { %1508 = vmatprep.mubr.f32.mxu0 %v872_v6  ;;  %1520 = vmatprep.mubr.f32.mxu1 %v880_v7 }
 0x287   : > { %1509 = vmatmul.mubr.f32.vlgmr.msra.gmra.mxu0 %v873_v8  ;;  %1521 = vmatmul.mubr.f32.vlgmr.msra.gmra.mxu1 %v881_v9 }
 0x288   : > { %1511 = vmatprep.mubr.f32.mxu0 %v874_v10  ;;  %1523 = vmatprep.mubr.f32.mxu1 %v882_v11 }
 0x28b   : > { %1512 = vmatmul.mubr.f32.gmra.mxu0 %v875_v12  ;;  %1524 = vmatmul.mubr.f32.gmra.mxu1 %v883_v13 }
 0x28c   : > { %1514 = vmatprep.mubr.f32.mxu0 %v876_v14  ;;  %1526 = vmatprep.mubr.f32.mxu1 %v884_v15 }
 0x28f   : > { %1515 = vmatmul.mubr.f32.gmra.mxu0 %v877_v16  ;;  %1527 = vmatmul.mubr.f32.gmra.mxu1 %v885_v17 }
 0x290   : > { %1517 = vmatprep.mubr.f32.mxu0 %v878_v18  ;;  %1529 = vmatprep.mubr.f32.mxu1 %v886_v19 }
 0x293   : > { %1518 = vmatmul.mubr.f32.gmra.mxu0 %v879_v20  ;;  %1530 = vmatmul.mubr.f32.gmra.mxu1 %v887_v21 }
 0x347   : > { %v1510_v23 = vpop.f32.mrf.mxu0  ;;  %v1522_v24 = vpop.f32.mrf.mxu1 }
 0x348   : > { %v983_v25 = vadd.f32 %v1510_v23, %v1260_v22  ;;  %v1023_v27 = vadd.f32 %v1522_v24, %v1260_v22 }
 0x349   : > { %v977_v28 = vpop.f32.mrf.mxu0  ;;  %v1017_v29 = vpop.f32.mrf.mxu1 }
 0x34a   : > { %1057 = vst [vmem:[%s2265_s11 + $0x8] sm:$0xff] %v983_v25  ;;  %1065 = vst [vmem:[%s2265_s11 + $0x48] sm:$0xff] %v1023_v27  ;;  %v978_v30 = vadd.f32 %v1260_v22, %v977_v28  ;;  %v1018_v31 = vadd.f32 %v1260_v22, %v1017_v29 }
 0x34b   : > { %v1513_v32 = vpop.f32.mrf.mxu0  ;;  %v1525_v33 = vpop.f32.mrf.mxu1 }
 0x34c   : > { %1056 = vst [vmem:[%s2265_s11] sm:$0xff] %v978_v30  ;;  %1064 = vst [vmem:[%s2265_s11 + $0x40] sm:$0xff] %v1018_v31  ;;  %v993_v34 = vadd.f32 %v1513_v32, %v1260_v22  ;;  %v1033_v35 = vadd.f32 %v1525_v33, %v1260_v22 }
 0x34d   : > { %v987_v36 = vpop.f32.mrf.mxu0  ;;  %v1027_v37 = vpop.f32.mrf.mxu1 }
 0x34e   : > { %1059 = vst [vmem:[%s2265_s11 + $0x18] sm:$0xff] %v993_v34  ;;  %1067 = vst [vmem:[%s2265_s11 + $0x58] sm:$0xff] %v1033_v35  ;;  %v988_v38 = vadd.f32 %v1260_v22, %v987_v36  ;;  %v1028_v39 = vadd.f32 %v1260_v22, %v1027_v37 }
 0x34f   : > { %v1516_v40 = vpop.f32.mrf.mxu0  ;;  %v1528_v41 = vpop.f32.mrf.mxu1 }
 0x350   : > { %1058 = vst [vmem:[%s2265_s11 + $0x10] sm:$0xff] %v988_v38  ;;  %1066 = vst [vmem:[%s2265_s11 + $0x50] sm:$0xff] %v1028_v39  ;;  %v1003_v42 = vadd.f32 %v1516_v40, %v1260_v22  ;;  %v1043_v43 = vadd.f32 %v1528_v41, %v1260_v22 }
 0x351   : > { %v997_v44 = vpop.f32.mrf.mxu0  ;;  %v1037_v45 = vpop.f32.mrf.mxu1 }
 0x352   : > { %1061 = vst [vmem:[%s2265_s11 + $0x28] sm:$0xff] %v1003_v42  ;;  %1069 = vst [vmem:[%s2265_s11 + $0x68] sm:$0xff] %v1043_v43  ;;  %v998_v46 = vadd.f32 %v1260_v22, %v997_v44  ;;  %v1038_v47 = vadd.f32 %v1260_v22, %v1037_v45 }
 0x353   : > { %v1519_v48 = vpop.f32.mrf.mxu0  ;;  %v1531_v49 = vpop.f32.mrf.mxu1 }
 0x354   : > { %1060 = vst [vmem:[%s2265_s11 + $0x20] sm:$0xff] %v998_v46  ;;  %1068 = vst [vmem:[%s2265_s11 + $0x60] sm:$0xff] %v1038_v47  ;;  %v1013_v50 = vadd.f32 %v1519_v48, %v1260_v22  ;;  %v1053_v51 = vadd.f32 %v1531_v49, %v1260_v22 }
 0x355   : > { %v1007_v52 = vpop.f32.mrf.mxu0  ;;  %v1047_v53 = vpop.f32.mrf.mxu1 }
 0x356   : > { %1063 = vst [vmem:[%s2265_s11 + $0x38] sm:$0xff] %v1013_v50  ;;  %1071 = vst [vmem:[%s2265_s11 + $0x78] sm:$0xff] %v1053_v51  ;;  %v1008_v54 = vadd.f32 %v1260_v22, %v1007_v52  ;;  %v1048_v55 = vadd.f32 %v1260_v22, %v1047_v53 }
 0x358   : > { %1062 = vst [vmem:[%s2265_s11 + $0x30] sm:$0xff] %v1008_v54  ;;  %1070 = vst [vmem:[%s2265_s11 + $0x70] sm:$0xff] %v1048_v55 }
 0x359 PF: > { %s2490_s9 = sld [smem:[#allocation21_spill]]  ;;  %s1088_s24 = sshll.u32 %s2265_s11, 4  ;;  %s2363_s24 = int_to_ptr.vmem [resolvable:$true] %s1088_s24 }
 0x35a   : > { %s2491_s27 = sld [smem:[#allocation24_spill]]  ;;  %s1073_s1 = scalar_lea.sflag [#allocation5], %s2239_s0 }
 0x35b   : > { %s2492_s15 = sld [smem:[#allocation32_spill]]  ;;  %s1844_s14 = scalar_lea.vmem %s2363_s24, 2048 }
 0x35c   : > { %p1845_p9 = scmp.ne.s32.totalorder %s2363_s24, %s1844_s14  ;;  %s1989_s2 = smov [#allocation12]  }
 0x35d   : > { %s1848_s17 = sshll.u32 %s1989_s2, 4  ;;  %s1849_s17 = int_to_ptr.vmem [resolvable:$false] %s1848_s17 }
 0x35e   : > { %s1850_s21 = scalar_lea.vmem %s1849_s17, 4096  ;;  %p1851_p12 = scmp.lt.s32.totalorder %s2363_s24, %s1849_s17 }
 0x35f   : > { %s1267_s28 = sshll.u32 %s2490_s9, 11  ;;  %p1852_p6 = scmp.lt.s32.totalorder %s1850_s21, %s1844_s14 }
 0x360   : > { %p2493_p13 = scmp.ne.s32.totalorder %s2491_s27, 0 }
 0x361   : > { %s2360_s26 = scalar_lea.hbm %s2492_s15, %s1267_s28  ;;  %p1853_p10 = por %p1852_p6, %p1851_p12 }
 0x362   : > { %p1846_p2 = pnand %p1845_p9, %p2493_p13 }
 0x364   : > { %p1847_p8 = pneg %p1846_p2 }
 0x366   : > { %p1854_p4 = pnand %p1853_p10, %p1847_p8 }
 0x368   : > { %1857 = shalt.err (!%p1854_p4)
}
 0x369   : > { %s1858_s11 = scalar_lea.hbm %s2360_s26, 2048  ;;  %s1862_s12 = scalar_lea.hbm %s2492_s15, 4096 }
 0x36a   : > { %p1859_p11 = scmp.ne.s32.totalorder %s2360_s26, %s1858_s11  ;;  %p1863_p0 = scmp.lt.s32.totalorder %s2360_s26, %s2492_s15 }
 0x36b   : > { %p1864_p1 = scmp.lt.s32.totalorder %s1862_s12, %s1858_s11 }
 0x36c   : > { %p1860_p5 = pnand %p1859_p11, %p2493_p13 }
 0x36d   : > { %p1865_p7 = por %p1864_p1, %p1863_p0 }
 0x36e   : > { %p1861_p3 = pneg %p1860_p5 }
 0x370   : > { %p1866_p9 = pnand %p1865_p7, %p1861_p3 }
 0x372   : > { %1869 = shalt.err (!%p1866_p9)
}
 0x373   : > { %s1990_s18 = smov 128   ;;  %s1991_s6 = smov 8  }
 0x374   : > { %1580 = dma.vmem_to_hbm [thread:$0]  (%p2493_p13), %s2363_s24, 2048, %s2360_s26, %s1073_s1, %s1990_s18, %s1990_s18, %s1991_s6  }
 0x375 PF: > { %s2494_s20 = sld [smem:[#allocation18_spill]]  ;;  %p1610_p2 = scmp.ge.s32.totalorder %s1976_s7, 2 }
 0x376   : > { %s2495_s9 = sld [smem:[#allocation22_spill]] }
 0x37b   : > { %s1103_s28 = sand.u32 1, %s2494_s20  }
 0x37c   : > { %p2496_p8 = scmp.ne.s32.totalorder %s2495_s9, 0  ;;  %s1104_s10 = scalar_lea.sflag [#allocation5], %s1103_s28 }
 0x37e   : > { %p1600_p12 = pnand %p1610_p2, %p2496_p8 }
 0x380   : > { %p1601_p6 = pneg %p1600_p12 }
 0x382   : > { %1931 = dma.done.wait (%p1601_p6), %s1104_s10, 2048  }
 0x383   : > { %1933 = vsyncadd (%p1601_p6), %s1104_s10, 4294965248  ;;  %s26_s7 = sadd.s32 1, %s1976_s7   ;;  %s2497_s0 = sld [smem:[#allocation19_spill]] }
 0x384   : > { %p23_p10 = scmp.ge.s32.totalorder %s26_s7, 10   ;;  %s2498_s26 = sld [smem:[#allocation26_spill]] }
 0x385   : > { %s2499_s13 = sld [smem:[#allocation23_spill]]  ;;  %s2501_s21 = smov %s1940_s22 }
 0x386   : > { %s2500_s1 = sld [smem:[#allocation25_spill]]  ;;  %s2502_s22 = smov %s1944_s23 }
 0x387   : > { %s2503_s23 = smov %s2194_s4  ;;  %s2504_s24 = smov %s1952_s25 }
 0x388   : > { %s2506_s27 = smov %s1968_s29  ;;  %s2507_s28 = smov %s1972_s30 }
 0x389   : > { %s2505_s25 = smov %s2497_s0  ;;  %25 = sbr.rel (!%p23_p10) target bundleno = 19 (0x13), region = 124 }
 0x38b   : > { %s2508_s29 = smov %s2499_s13 }
 0x38c   : > { %s2509_s30 = smov %s2500_s1 }
 0x38e   :  { %1109 = vsyncpa [#allocation4], 1 }
 0x38f   :  { %1111 = vsyncpa [#allocation4 + $0x1], 1 }
 0x390   :  { %1112 = vsyncpa [#allocation7], 1 }
 0x391   :  { %1113 = vsyncpa [#allocation10], 1 }
 0x392   :  { %1115 = vsyncpa [#allocation10 + $0x1], 1 }
 0x393   :  { %1116 = vsyncpa [#allocation5], 1 }
 0x394   :  { %1118 = vsyncpa [#allocation5 + $0x1], 1 }

</bundles_post_ra>
